<compile_context>
chip_gen: v7x
topology: tpu7x:2x2x1
jax: 0.10.0
libtpu: 0.0.40
codegen_flags: <defaults>
</compile_context>

<pallas_src>
import functools

import jax
import jax.numpy as jnp
import numpy as np
from jax.experimental import pallas as pl
from jax.experimental.pallas import tpu as pltpu


# ----------------------------- Pallas kernel -------------------------------


def _stft_loss_kernel(fr_ref, basis_ref, acc_ref, *, tm, n_fft, n_freq_pad):
    """One row-tile step.

    fr_ref    : (2, tm, n_fft)        [0] = y frames, [1] = y_hat frames
    basis_ref : (n_fft, 2*n_freq_pad) [window*cos | -window*sin], lane-padded
    acc_ref   : (3, 8, n_freq_pad)    grid-resident sublane/lane-partial sums:
                  [0]: sum |log mag_y - log mag_h|
                  [1]: sum (mag_y - mag_h)^2
                  [2]: sum mag_y^2
    """
    # (Re-)init accumulators at the start of each reduction sweep.
    @pl.when(pl.program_id(1) == 0)
    def _():
        acc_ref[...] = jnp.zeros_like(acc_ref)

    # Free view: (2, tm, n_fft) -> (2*tm, n_fft); tm % 8 == 0 keeps the tiling.
    fr = fr_ref[...].reshape(2 * tm, n_fft)
    basis = basis_ref[...]

    # Single MXU matmul: [y ; y_hat] x [cos | sin] -> (2*tm, 2*n_freq_pad).
    res = jnp.dot(fr, basis, preferred_element_type=jnp.float32)
    re = res[:, :n_freq_pad]                    # lane-aligned (multiple of 128)
    im = res[:, n_freq_pad:]
    ms = jnp.maximum(re * re + im * im, 1e-8)   # squared magnitude
    ms_y = ms[:tm]                              # sublane-aligned (tm % 8 == 0)
    ms_h = ms[tm:]

    # |log mag_y - log mag_h| == 0.5*|log(ms_y/ms_h)|: one log per element,
    # and padded rows / padded basis columns (ms_y == ms_h == 1e-8) still
    # cancel exactly (ratio == 1).
    abs_term = 0.5 * jnp.abs(jnp.log(ms_y / ms_h))
    diff = jnp.sqrt(ms_y) - jnp.sqrt(ms_h)

    def _sub8(x):
        # (tm, F) -> (8, F) partial reduction using VPU adds only (no XLU).
        return jnp.sum(x.reshape(tm // 8, 8, n_freq_pad), axis=0)

    # Full, unmasked slab RMWs (no per-step sublane concat / masked stores).
    acc_ref[0] += _sub8(abs_term)
    acc_ref[1] += _sub8(diff * diff)
    acc_ref[2] += _sub8(ms_y)                   # == sum mag_y^2, no sqrt trip


# ------------------------------ JAX glue ------------------------------------


def _round_up(x, m):
    return (x + m - 1) // m * m


def _hann_window(win_length):
    # torch.hann_window default is periodic=True.
    n = jnp.arange(win_length, dtype=jnp.float32)
    return 0.5 - 0.5 * jnp.cos(2.0 * jnp.pi * n / win_length)


def _make_fused_basis(n_fft, win_length, n_freq_pad):
    """Fused windowed DFT basis [win*cos | -win*sin], each half padded to
    n_freq_pad lanes.  Shape: (n_fft, 2*n_freq_pad)."""
    win = _hann_window(win_length)
    left = (n_fft - win_length) // 2            # torch.stft center-pads window
    win = jnp.pad(win, (left, n_fft - win_length - left))
    n = jnp.arange(n_fft, dtype=jnp.float32)[:, None]
    n_freq = n_fft // 2 + 1
    f = jnp.arange(n_freq, dtype=jnp.float32)[None, :]
    ang = 2.0 * jnp.pi * f * n / n_fft
    cos_b = win[:, None] * jnp.cos(ang)         # real part
    sin_b = -win[:, None] * jnp.sin(ang)        # imag part (sign irrelevant)
    pad = n_freq_pad - n_freq
    cos_b = jnp.pad(cos_b, ((0, 0), (0, pad)))
    sin_b = jnp.pad(sin_b, ((0, 0), (0, pad)))
    return jnp.concatenate([cos_b, sin_b], axis=1).astype(jnp.float32)


def _frames(x, n_fft, hop_length):
    """x: (N, L) -> (N, n_frames, n_fft); torch.stft center=True, reflect pad."""
    # TODO(synk): move framing into the kernel (strided HBM->VMEM DMAs of the
    # padded signal) to drop the n_fft/hop-times-inflated framed tensor from
    # HBM entirely; needs manual (P4) double-buffering to stay hidden.
    pad = n_fft // 2
    xp = jnp.pad(x, ((0, 0), (pad, pad)), mode="reflect")
    n_frames = 1 + (xp.shape[1] - n_fft) // hop_length
    if n_fft % hop_length == 0:
        # Gather-free im2col: n_fft/hop static strided slices + one concat.
        pieces = [
            xp[:, j * hop_length:j * hop_length + n_frames * hop_length]
            .reshape(x.shape[0], n_frames, hop_length)
            for j in range(n_fft // hop_length)
        ]
        return jnp.concatenate(pieces, axis=-1)
    idx = (hop_length * jnp.arange(n_frames)[:, None]
           + jnp.arange(n_fft)[None, :])
    return xp[:, idx]


def _device_config():
    """(vmem_capacity_bytes, two_tensorcores) with conservative fallbacks."""
    vmem_cap = 128 * 1024 * 1024
    try:
        vmem_cap = int(pltpu.get_tpu_info().vmem_capacity_bytes)
    except Exception:
        pass
    two_core = vmem_cap <= 96 * 1024 * 1024     # v7x-class: 64 MiB VMEM, 2 TCs
    try:
        kind = jax.devices()[0].device_kind.lower()
        two_core = two_core or ("7" in kind)
    except Exception:
        pass
    return vmem_cap, two_core


def _vmem_estimate_bytes(tm, n_fft, n_freq_pad):
    words = (2 * (2 * tm * n_fft)               # frames input, double-buffered
             + 2 * (n_fft * 2 * n_freq_pad)     # basis input, double-buffered
             + 2 * (3 * 8 * n_freq_pad)         # resident accumulator output
             + 12 * (tm * n_freq_pad))          # matmul result + ms/diff temps
    return words * 4


def stft_loss(y_hat, y, n_fft, hop_length, win_length, *, tm=None,
              num_splits=None):
    """Returns (loss_mag, loss_sc) matching STFTLoss.forward."""
    y_hat = y_hat.astype(jnp.float32)
    y = y.astype(jnp.float32)
    B, L = y.shape

    vmem_cap, two_core = _device_config()
    vmem_clamp = (vmem_cap * 13) // 16          # ~52 MiB (v7x) / ~104 MiB (v5e/v6e)
    if tm is None:
        tm = 512 if vmem_cap > 96 * 1024 * 1024 else 256
    if num_splits is None:
        num_splits = 2 if two_core else 1       # parallel axis only on 2-TC chips

    n_freq = n_fft // 2 + 1
    n_freq_pad = _round_up(n_freq, 128)
    basis = _make_fused_basis(n_fft, win_length, n_freq_pad)

    # Stack the two signals BEFORE framing so the kernel can fetch matching
    # y / y_hat frame tiles as a single block (no concatenated framed tensor).
    sig = jnp.stack([y, y_hat], axis=0).reshape(2 * B, L)
    fr = _frames(sig, n_fft, hop_length)        # (2B, n_frames, n_fft)
    n_frames = fr.shape[1]
    R = B * n_frames

    tm_eff = _round_up(min(tm, R), 8)           # don't over-pad tiny inputs
    while (_vmem_estimate_bytes(tm_eff, n_fft, n_freq_pad) > vmem_clamp
           and tm_eff > 8):
        tm_eff = max(8, _round_up(tm_eff // 2, 8))
    n_tiles = pl.cdiv(R, tm_eff)
    n_splits = max(1, min(num_splits, n_tiles))
    tiles_per_split = pl.cdiv(n_tiles, n_splits)
    r_pad = n_splits * tiles_per_split * tm_eff

    fr = fr.reshape(2, R, n_fft)
    fr = jnp.pad(fr, ((0, 0), (0, r_pad - R), (0, 0)))   # (2, r_pad, n_fft)

    kernel = functools.partial(_stft_loss_kernel, tm=tm_eff, n_fft=n_fft,
                               n_freq_pad=n_freq_pad)

    grid_spec = pltpu.PrefetchScalarGridSpec(
        num_scalar_prefetch=0,
        grid=(n_splits, tiles_per_split),
        in_specs=[
            # One block = matching y / y_hat frame tiles, stacked on dim 0.
            pl.BlockSpec((2, tm_eff, n_fft),
                         lambda s, i: (0, s * tiles_per_split + i, 0)),
            # Constant DFT basis (constant index map -> fetched once).
            # TODO(synk): pipeline_mode=pl.Buffered(1) to single-buffer it.
            pl.BlockSpec((n_fft, 2 * n_freq_pad), lambda s, i: (0, 0)),
        ],
        out_specs=pl.BlockSpec((None, 3, 8, n_freq_pad),
                               lambda s, i: (s, 0, 0, 0)),
    )

    est = _vmem_estimate_bytes(tm_eff, n_fft, n_freq_pad)
    vmem_limit = int(min(max(int(1.25 * est), 8 * 1024 * 1024), vmem_clamp))

    acc = pl.pallas_call(
        kernel,
        out_shape=jax.ShapeDtypeStruct((n_splits, 3, 8, n_freq_pad),
                                       jnp.float32),
        grid_spec=grid_spec,
        compiler_params=pltpu.CompilerParams(
            dimension_semantics=("parallel", "arbitrary"),
            vmem_limit_bytes=vmem_limit),
    )(fr, basis)

    sums = jnp.sum(acc, axis=(0, 2, 3))         # (3,)
    abs_sum, sqd_sum, sqy_sum = sums[0], sums[1], sums[2]

    # Padded rows / padded basis columns give ms == 1e-8 for BOTH signals: the
    # log and diff terms cancel exactly; only sum(mag_y^2) picks up exactly
    # 1e-8 per padded element — subtract that here.
    pad_elems = r_pad * n_freq_pad - R * n_freq
    sqy_sum = sqy_sum - jnp.float32(1e-8) * pad_elems

    loss_mag = abs_sum / jnp.float32(R * n_freq)
    loss_sc = jnp.sqrt(sqd_sum) / jnp.sqrt(sqy_sum)
    return loss_mag, loss_sc


# --------------------------- pure-JAX reference ------------------------------


def _stft_loss_ref(y_hat, y, n_fft, hop_length, win_length):
    n_freq = n_fft // 2 + 1
    fused = _make_fused_basis(n_fft, win_length, n_freq)   # no lane padding
    cos_b, sin_b = fused[:, :n_freq], fused[:, n_freq:]

    def mag(x):
        frm = _frames(x.astype(jnp.float32), n_fft, hop_length)
        M = frm @ cos_b
        P = frm @ sin_b
        return jnp.sqrt(jnp.clip(M * M + P * P, 1e-8, None))

    y_M = mag(y)
    yh_M = mag(y_hat)
    loss_mag = jnp.mean(jnp.abs(jnp.log(y_M) - jnp.log(yh_M)))
    loss_sc = (jnp.sqrt(jnp.sum((y_M - yh_M) ** 2))
               / jnp.sqrt(jnp.sum(y_M ** 2)))
    return loss_mag, loss_sc


# --------------------------------- main --------------------------------------


if __name__ == "__main__":
    n_fft, hop_length, win_length = 128, 32, 128
    B, L = 2, 256

    key = jax.random.PRNGKey(0)
    k1, k2 = jax.random.split(key)
    y_hat = jax.random.normal(k1, (B, L), dtype=jnp.float32)
    y = jax.random.normal(k2, (B, L), dtype=jnp.float32)

    loss_mag, loss_sc = stft_loss(y_hat, y, n_fft, hop_length, win_length)
    loss_mag = jax.block_until_ready(loss_mag)
    loss_sc = jax.block_until_ready(loss_sc)

    ref_mag, ref_sc = _stft_loss_ref(y_hat, y, n_fft, hop_length, win_length)
    np.testing.assert_allclose(np.asarray(loss_mag), np.asarray(ref_mag),
                               rtol=1e-4, atol=1e-5)
    np.testing.assert_allclose(np.asarray(loss_sc), np.asarray(ref_sc),
                               rtol=1e-4, atol=1e-5)

    print("KERNEL_OK")
</pallas_src>

<mosaic_0001>
module attributes {stable_mosaic.version = 11 : i64} {
  func.func @_stft_loss_kernel(%arg0: i32, %arg1: i32, %arg2: memref<2x24x128xf32, #tpu.memory_space<vmem>>, %arg3: memref<128x256xf32, #tpu.memory_space<vmem>>, %arg4: memref<1x3x8x128xf32, #tpu.memory_space<vmem>>) attributes {dimension_semantics = [#tpu.dimension_semantics<parallel>, #tpu.dimension_semantics<arbitrary>], iteration_bounds = array<i64: 1, 1>, scalar_prefetch = 0 : i64, scratch_operands = 0 : i64, tpu.core_type = #tpu.core_type<tc>, window_params = [{transform_indices = @transform_0, window_bounds = array<i64: 2, 24, 128>}, {pipeline_mode = #tpu.pipeline_mode<synchronous>, transform_indices = @transform_1, window_bounds = array<i64: 128, 256>}, {transform_indices = @transform_2, window_bounds = array<i64: 1, 3, 8, 128>}]} {
    %c0_i32 = arith.constant 0 : i32
    %0 = arith.cmpi eq, %arg1, %c0_i32 : i32
    %1 = arith.extui %0 : i1 to i32
    %c0_i32_0 = arith.constant 0 : i32
    %2 = arith.cmpi ne, %1, %c0_i32_0 : i32
    scf.if %2 {
      %cst_32 = arith.constant 0.000000e+00 : f32
      %49 = vector.broadcast %cst_32 : f32 to vector<3x8x128xf32>
      %c0_33 = arith.constant 0 : index
      %c0_34 = arith.constant 0 : index
      %c0_35 = arith.constant 0 : index
      %c0_36 = arith.constant 0 : index
      %50 = vector.load %arg4[%c0_33, %c0_34, %c0_35, %c0_36] : memref<1x3x8x128xf32, #tpu.memory_space<vmem>>, vector<1x3x8x128xf32>
      %51 = vector.shape_cast %50 : vector<1x3x8x128xf32> to vector<3x8x128xf32>
      %52 = vector.shape_cast %49 : vector<3x8x128xf32> to vector<1x3x8x128xf32>
      tpu.vector_store %arg4[%c0_33, %c0_34, %c0_35, %c0_36], %52 {strides = array<i32>} : memref<1x3x8x128xf32, #tpu.memory_space<vmem>>, vector<1x3x8x128xf32>,
    } else {
    }
    %c0 = arith.constant 0 : index
    %c0_1 = arith.constant 0 : index
    %c0_2 = arith.constant 0 : index
    %3 = vector.load %arg2[%c0, %c0_1, %c0_2] : memref<2x24x128xf32, #tpu.memory_space<vmem>>, vector<2x24x128xf32>
    %4 = vector.shape_cast %3 : vector<2x24x128xf32> to vector<48x128xf32>
    %c0_3 = arith.constant 0 : index
    %c0_4 = arith.constant 0 : index
    %5 = vector.load %arg3[%c0_3, %c0_4] : memref<128x256xf32, #tpu.memory_space<vmem>>, vector<128x256xf32>
    %cst = arith.constant dense<0.000000e+00> : vector<48x256xf32>
    %6 = tpu.matmul %4, %5, %cst {dimension_numbers = #tpu.dot_dimension_numbers<[1], [0], [0], [1], [0, 0, 1, 1], [], []>} : vector<48x128xf32>, vector<128x256xf32>, vector<48x256xf32> -> vector<48x256xf32>
    %7 = vector.extract_strided_slice %6 {offsets = [0, 0], sizes = [48, 128], strides = [1, 1]} : vector<48x256xf32> to vector<48x128xf32>
    %8 = vector.extract_strided_slice %6 {offsets = [0, 128], sizes = [48, 128], strides = [1, 1]} : vector<48x256xf32> to vector<48x128xf32>
    %9 = arith.mulf %7, %7 : vector<48x128xf32>
    %10 = arith.mulf %8, %8 : vector<48x128xf32>
    %11 = arith.addf %9, %10 : vector<48x128xf32>
    %cst_5 = arith.constant 9.99999993E-9 : f32
    %12 = vector.broadcast %cst_5 : f32 to vector<48x128xf32>
    %13 = arith.maximumf %11, %12 : vector<48x128xf32>
    %14 = vector.extract_strided_slice %13 {offsets = [0, 0], sizes = [24, 128], strides = [1, 1]} : vector<48x128xf32> to vector<24x128xf32>
    %15 = vector.extract_strided_slice %13 {offsets = [24, 0], sizes = [24, 128], strides = [1, 1]} : vector<48x128xf32> to vector<24x128xf32>
    %16 = arith.divf %14, %15 : vector<24x128xf32>
    %17 = math.log %16 : vector<24x128xf32>
    %18 = math.absf %17 : vector<24x128xf32>
    %cst_6 = arith.constant 5.000000e-01 : f32
    %19 = vector.broadcast %cst_6 : f32 to vector<24x128xf32>
    %20 = arith.mulf %19, %18 : vector<24x128xf32>
    %21 = math.sqrt %14 : vector<24x128xf32>
    %22 = math.sqrt %15 : vector<24x128xf32>
    %23 = arith.subf %21, %22 : vector<24x128xf32>
    %c0_7 = arith.constant 0 : index
    %c0_8 = arith.constant 0 : index
    %c0_9 = arith.constant 0 : index
    %c0_10 = arith.constant 0 : index
    %24 = vector.load %arg4[%c0_7, %c0_8, %c0_9, %c0_10] : memref<1x3x8x128xf32, #tpu.memory_space<vmem>>, vector<1x1x8x128xf32>
    %25 = vector.shape_cast %24 : vector<1x1x8x128xf32> to vector<8x128xf32>
    %26 = vector.shape_cast %20 : vector<24x128xf32> to vector<3x8x128xf32>
    %cst_11 = arith.constant dense<0.000000e+00> : vector<8x128xf32>
    %27 = vector.multi_reduction <add>, %26, %cst_11 [0] : vector<3x8x128xf32> to vector<8x128xf32>
    %28 = arith.addf %25, %27 : vector<8x128xf32>
    %c0_12 = arith.constant 0 : index
    %c0_13 = arith.constant 0 : index
    %c0_14 = arith.constant 0 : index
    %c0_15 = arith.constant 0 : index
    %29 = vector.load %arg4[%c0_12, %c0_13, %c0_14, %c0_15] : memref<1x3x8x128xf32, #tpu.memory_space<vmem>>, vector<1x1x8x128xf32>
    %30 = vector.shape_cast %29 : vector<1x1x8x128xf32> to vector<8x128xf32>
    %31 = vector.shape_cast %28 : vector<8x128xf32> to vector<1x1x8x128xf32>
    tpu.vector_store %arg4[%c0_12, %c0_13, %c0_14, %c0_15], %31 {strides = array<i32>} : memref<1x3x8x128xf32, #tpu.memory_space<vmem>>, vector<1x1x8x128xf32>,
    %c0_16 = arith.constant 0 : index
    %c1 = arith.constant 1 : index
    %c0_17 = arith.constant 0 : index
    %c0_18 = arith.constant 0 : index
    %32 = vector.load %arg4[%c0_16, %c1, %c0_17, %c0_18] : memref<1x3x8x128xf32, #tpu.memory_space<vmem>>, vector<1x1x8x128xf32>
    %33 = vector.shape_cast %32 : vector<1x1x8x128xf32> to vector<8x128xf32>
    %34 = arith.mulf %23, %23 : vector<24x128xf32>
    %35 = vector.shape_cast %34 : vector<24x128xf32> to vector<3x8x128xf32>
    %cst_19 = arith.constant dense<0.000000e+00> : vector<8x128xf32>
    %36 = vector.multi_reduction <add>, %35, %cst_19 [0] : vector<3x8x128xf32> to vector<8x128xf32>
    %37 = arith.addf %33, %36 : vector<8x128xf32>
    %c0_20 = arith.constant 0 : index
    %c1_21 = arith.constant 1 : index
    %c0_22 = arith.constant 0 : index
    %c0_23 = arith.constant 0 : index
    %38 = vector.load %arg4[%c0_20, %c1_21, %c0_22, %c0_23] : memref<1x3x8x128xf32, #tpu.memory_space<vmem>>, vector<1x1x8x128xf32>
    %39 = vector.shape_cast %38 : vector<1x1x8x128xf32> to vector<8x128xf32>
    %40 = vector.shape_cast %37 : vector<8x128xf32> to vector<1x1x8x128xf32>
    tpu.vector_store %arg4[%c0_20, %c1_21, %c0_22, %c0_23], %40 {strides = array<i32>} : memref<1x3x8x128xf32, #tpu.memory_space<vmem>>, vector<1x1x8x128xf32>,
    %c0_24 = arith.constant 0 : index
    %c2 = arith.constant 2 : index
    %c0_25 = arith.constant 0 : index
    %c0_26 = arith.constant 0 : index
    %41 = vector.load %arg4[%c0_24, %c2, %c0_25, %c0_26] : memref<1x3x8x128xf32, #tpu.memory_space<vmem>>, vector<1x1x8x128xf32>
    %42 = vector.shape_cast %41 : vector<1x1x8x128xf32> to vector<8x128xf32>
    %43 = vector.shape_cast %14 : vector<24x128xf32> to vector<3x8x128xf32>
    %cst_27 = arith.constant dense<0.000000e+00> : vector<8x128xf32>
    %44 = vector.multi_reduction <add>, %43, %cst_27 [0] : vector<3x8x128xf32> to vector<8x128xf32>
    %45 = arith.addf %42, %44 : vector<8x128xf32>
    %c0_28 = arith.constant 0 : index
    %c2_29 = arith.constant 2 : index
    %c0_30 = arith.constant 0 : index
    %c0_31 = arith.constant 0 : index
    %46 = vector.load %arg4[%c0_28, %c2_29, %c0_30, %c0_31] : memref<1x3x8x128xf32, #tpu.memory_space<vmem>>, vector<1x1x8x128xf32>
    %47 = vector.shape_cast %46 : vector<1x1x8x128xf32> to vector<8x128xf32>
    %48 = vector.shape_cast %45 : vector<8x128xf32> to vector<1x1x8x128xf32>
    tpu.vector_store %arg4[%c0_28, %c2_29, %c0_30, %c0_31], %48 {strides = array<i32>} : memref<1x3x8x128xf32, #tpu.memory_space<vmem>>, vector<1x1x8x128xf32>,
    return
  }
  func.func @transform_0(%arg0: i32, %arg1: i32) -> (i32, i32, i32) {
    %c1_i32 = arith.constant 1 : i32
    %0 = arith.muli %arg0, %c1_i32 : i32
    %1 = arith.addi %0, %arg1 : i32
    %c0_i32 = arith.constant 0 : i32
    %c0_i32_0 = arith.constant 0 : i32
    %c0_i32_1 = arith.constant 0 : i32
    return %c0_i32, %1, %c0_i32_0 : i32, i32, i32
  }
  func.func @transform_1(%arg0: i32, %arg1: i32) -> (i32, i32) {
    %c0_i32 = arith.constant 0 : i32
    %c0_i32_0 = arith.constant 0 : i32
    %c0_i32_1 = arith.constant 0 : i32
    return %c0_i32, %c0_i32_0 : i32, i32
  }
  func.func @transform_2(%arg0: i32, %arg1: i32) -> (i32, i32, i32, i32) {
    %c0_i32 = arith.constant 0 : i32
    %c0_i32_0 = arith.constant 0 : i32
    %c0_i32_1 = arith.constant 0 : i32
    %c0_i32_2 = arith.constant 0 : i32
    return %arg0, %c0_i32, %c0_i32_0, %c0_i32_1 : i32, i32, i32, i32
  }
}

</mosaic_0001>

<bundles_post_ra>
// kernel: tpu_custom_call.1
= control target key start
LH: loop header
LB: loop body
LE: loop exit
PB: predicated region body
PF: predicated region fallthrough
CT: control target
= control target key end

     0   :  { %7 = vsyncpa [#allocation3], 0  ;;  %s549_s0 = inlined_call_operand.hbm [shape: f32[2,24,128], index: 0, kind: input, shape index: {}]   ;;  %s550_s1 = inlined_call_operand.hbm [shape: f32[128,256], index: 1, kind: input, shape index: {}]   ;;  %s551_s2 = inlined_call_operand.hbm [shape: f32[1,3,8,128], index: 2, kind: output, shape index: {}]  }
   0x1   :  { %8 = vsyncpa [#allocation6], 0 }
   0x2   :  { %9 = vsyncpa [#allocation4], 0  ;;  %s469_s9 = smov [#allocation2]   ;;  %s397_s13 = scalar_lea.hbm %s549_s0, 768 }
   0x3   :  { %s19_s10 = sshll.u32 %s469_s9, 4  ;;  %p398_p0 = scmp.ne.s32.totalorder %s549_s0, %s397_s13  ;;  %s20_s10 = int_to_ptr.vmem [resolvable:$true] %s19_s10 }
   0x4   :  { %p401_p1 = scmp.lt.u32.totalorder %s397_s13, %s549_s0 }
   0x6   :  { %p403_p2 = pnand %p401_p1, %p398_p0 }
   0x8   :  { %406 = shalt.err (!%p403_p2)
}
   0x9   :  { %s407_s18 = scalar_lea.vmem %s20_s10, 768  ;;  %p412_p4 = scmp.lt.s32.totalorder %s20_s10, %s20_s10 }
   0xa   :  { %p408_p3 = scmp.ne.s32.totalorder %s20_s10, %s407_s18  ;;  %p413_p5 = scmp.lt.s32.totalorder %s407_s18, %s407_s18 }
   0xc   :  { %p414_p6 = por %p413_p5, %p412_p4 }
   0xe   :  { %p415_p7 = pnand %p414_p6, %p408_p3 }
  0x10   :  { %418 = shalt.err (!%p415_p7)
}
  0x11   :  { %s470_s19 = smov 128   ;;  %s471_s20 = smov 8  }
  0x12   :  { %25 = dma.hbm_to_vmem [thread:$0]  %s549_s0, 768, %s20_s10, [#allocation3], %s470_s19, %s470_s19, %s471_s20  }
  0x13   :  { %s472_s23 = smov [#allocation5]   ;;  %s419_s27 = scalar_lea.hbm %s550_s1, 4096 }
  0x14   :  { %s31_s24 = sshll.u32 %s472_s23, 4  ;;  %p420_p8 = scmp.ne.s32.totalorder %s550_s1, %s419_s27  ;;  %s32_s24 = int_to_ptr.vmem [resolvable:$true] %s31_s24 }
  0x15   :  { %p423_p9 = scmp.lt.u32.totalorder %s419_s27, %s550_s1 }
  0x17   :  { %p425_p10 = pnand %p423_p9, %p420_p8 }
  0x19   :  { %428 = shalt.err (!%p425_p10)
}
  0x1a   :  { %s429_s4 = scalar_lea.vmem %s32_s24, 4096  ;;  %p434_p12 = scmp.lt.s32.totalorder %s32_s24, %s32_s24 }
  0x1b   :  { %p430_p11 = scmp.ne.s32.totalorder %s32_s24, %s429_s4  ;;  %p435_p13 = scmp.lt.s32.totalorder %s429_s4, %s429_s4 }
  0x1d   :  { %p436_p0 = por %p435_p13, %p434_p12 }
  0x1f   :  { %p437_p1 = pnand %p436_p0, %p430_p11 }
  0x21   :  { %440 = shalt.err (!%p437_p1)
}
  0x22   :  { %s473_s0 = smov 256   ;;  %s474_s5 = smov 16  }
  0x23   :  { %37 = dma.hbm_to_vmem [thread:$0]  %s550_s1, 4096, %s32_s24, [#allocation6], %s473_s0, %s473_s0, %s474_s5  }
  0x24   :  { %463 = dma.done.wait [#allocation3], 768  }
  0x25   :  { %464 = vsyncadd [#allocation3], 4294966528 }
  0x26   :  { %465 = dma.done.wait [#allocation6], 4096  }
  0x27   :  { %466 = vsyncadd [#allocation6], 4294963200  ;;  %v475_v0 = vmov 0.0   ;;  %v60_v1 = vld [vmem:[#allocation5 + $0x8] sm:$0xff]  ;;  %v62_v2 = vld [vmem:[#allocation5 + $0x18] sm:$0xff]  ;;  %s476_s1 = smov [#allocation7]  }
  0x28   :  { %155 = vmatprep.mubr.f32.mxu0 %v475_v0  ;;  %173 = vmatprep.mubr.f32.mxu1 %v475_v0  ;;  %v59_v3 = vld [vmem:[#allocation5] sm:$0xff]  ;;  %v317_v4 = vpack.c.bf16 %v62_v2, %v60_v1  ;;  %v61_v5 = vld [vmem:[#allocation5 + $0x10] sm:$0xff]  ;;  %v64_v6 = vld [vmem:[#allocation5 + $0x28] sm:$0xff]  ;;  %s304_s8 = sshll.u32 %s476_s1, 4  ;;  %s305_s8 = int_to_ptr.vmem [resolvable:$true] %s304_s8 }
  0x29   :  { %v66_v7 = vld [vmem:[#allocation5 + $0x38] sm:$0xff]  ;;  %v319_v8 = vpack.c.bf16 %v61_v5, %v59_v3  ;;  %v63_v10 = vld [vmem:[#allocation5 + $0x20] sm:$0xff]  ;;  %v65_v11 = vld [vmem:[#allocation5 + $0x30] sm:$0xff]  ;;  %s441_s9 = scalar_lea.vmem %s305_s8, 384  ;;  %p446_p3 = scmp.lt.s32.totalorder %s305_s8, %s305_s8 }
  0x2a   :  { %v321_v9 = vpack.c.bf16 %v66_v7, %v64_v6  ;;  %v68_v12 = vld [vmem:[#allocation5 + $0x48] sm:$0xff]  ;;  %318 = vmatprep.subr.bf16.mxu0 %v317_v4  ;;  %349 = vmatprep.subr.bf16.mxu1 %v317_v4  ;;  %v70_v13 = vld [vmem:[#allocation5 + $0x58] sm:$0xff]  ;;  %v323_v14 = vpack.c.bf16 %v65_v11, %v63_v10  ;;  %v67_v16 = vld [vmem:[#allocation5 + $0x40] sm:$0xff]  ;;  %p442_p2 = scmp.ne.s32.totalorder %s305_s8, %s441_s9  ;;  %p447_p4 = scmp.lt.s32.totalorder %s441_s9, %s441_s9 }
  0x2b   :  { %320 = vmatpush1.bf16.msra.mxu0 %v319_v8  ;;  %357 = vmatpush1.bf16.msra.mxu1 %v319_v8  ;;  %v325_v15 = vpack.c.bf16 %v70_v13, %v68_v12  ;;  %v69_v17 = vld [vmem:[#allocation5 + $0x50] sm:$0xff]  ;;  %v72_v18 = vld [vmem:[#allocation5 + $0x68] sm:$0xff]  ;;  %v74_v19 = vld [vmem:[#allocation5 + $0x78] sm:$0xff] }
  0x2c   :  { %322 = vmatprep.subr.bf16.mxu0 %v321_v9  ;;  %350 = vmatprep.subr.bf16.mxu1 %v321_v9  ;;  %v327_v20 = vpack.c.bf16 %v69_v17, %v67_v16  ;;  %v329_v21 = vpack.c.bf16 %v74_v19, %v72_v18  ;;  %v71_v22 = vld [vmem:[#allocation5 + $0x60] sm:$0xff]  ;;  %v73_v23 = vld [vmem:[#allocation5 + $0x70] sm:$0xff]  ;;  %v76_v24 = vld [vmem:[#allocation5 + $0x88] sm:$0xff]  ;;  %p448_p5 = por %p447_p4, %p446_p3 }
  0x2d   :  { %v78_v25 = vld [vmem:[#allocation5 + $0x98] sm:$0xff]  ;;  %v331_v26 = vpack.c.bf16 %v73_v23, %v71_v22  ;;  %v75_v28 = vld [vmem:[#allocation5 + $0x80] sm:$0xff]  ;;  %v77_v29 = vld [vmem:[#allocation5 + $0x90] sm:$0xff] }
  0x2e   :  { %v333_v27 = vpack.c.bf16 %v78_v25, %v76_v24  ;;  %v80_v30 = vld [vmem:[#allocation5 + $0xa8] sm:$0xff]  ;;  %v82_v31 = vld [vmem:[#allocation5 + $0xb8] sm:$0xff]  ;;  %v335_v32 = vpack.c.bf16 %v77_v29, %v75_v28  ;;  %v79_v34 = vld [vmem:[#allocation5 + $0xa0] sm:$0xff]  ;;  %p449_p6 = pnand %p448_p5, %p442_p2 }
  0x2f   :  { %324 = vmatpush1.bf16.msra.mxu0 %v323_v14  ;;  %358 = vmatpush1.bf16.msra.mxu1 %v323_v14  ;;  %v337_v33 = vpack.c.bf16 %v82_v31, %v80_v30  ;;  %v81_v35 = vld [vmem:[#allocation5 + $0xb0] sm:$0xff]  ;;  %v84_v36 = vld [vmem:[#allocation5 + $0xc8] sm:$0xff]  ;;  %v86_v37 = vld [vmem:[#allocation5 + $0xd8] sm:$0xff] }
  0x30   :  { %326 = vmatprep.subr.bf16.mxu0 %v325_v15  ;;  %351 = vmatprep.subr.bf16.mxu1 %v325_v15  ;;  %v339_v38 = vpack.c.bf16 %v81_v35, %v79_v34  ;;  %v341_v39 = vpack.c.bf16 %v86_v37, %v84_v36  ;;  %v83_v40 = vld [vmem:[#allocation5 + $0xc0] sm:$0xff]  ;;  %v85_v41 = vld [vmem:[#allocation5 + $0xd0] sm:$0xff]  ;;  %v88_v42 = vld [vmem:[#allocation5 + $0xe8] sm:$0xff] }
  0x31   :  { %v90_v43 = vld [vmem:[#allocation5 + $0xf8] sm:$0xff]  ;;  %v343_v44 = vpack.c.bf16 %v85_v41, %v83_v40  ;;  %v87_v46 = vld [vmem:[#allocation5 + $0xe0] sm:$0xff]  ;;  %v89_v47 = vld [vmem:[#allocation5 + $0xf0] sm:$0xff] }
  0x32   :  { %v345_v45 = vpack.c.bf16 %v90_v43, %v88_v42  ;;  %v347_v48 = vpack.c.bf16 %v89_v47, %v87_v46  ;;  %v53_v49 = vld [vmem:[#allocation2] sm:$0xff]  ;;  %v56_v50 = vld [vmem:[#allocation2 + $0x18] sm:$0xff]  ;;  %v54_v51 = vld [vmem:[#allocation2 + $0x8] sm:$0xff] }
  0x33   :  { %328 = vmatpush1.bf16.msra.mxu0 %v327_v20  ;;  %359 = vmatpush1.bf16.msra.mxu1 %v327_v20  ;;  %v57_v52 = vld [vmem:[#allocation2 + $0x20] sm:$0xff]  ;;  %v55_v53 = vld [vmem:[#allocation2 + $0x10] sm:$0xff]  ;;  %v58_v54 = vld [vmem:[#allocation2 + $0x28] sm:$0xff] }
  0x34   :  { %330 = vmatprep.subr.bf16.mxu0 %v329_v21  ;;  %352 = vmatprep.subr.bf16.mxu1 %v329_v21 }
  0x37   :  { %332 = vmatpush1.bf16.msra.mxu0 %v331_v26  ;;  %360 = vmatpush1.bf16.msra.mxu1 %v331_v26 }
  0x38   :  { %334 = vmatprep.subr.bf16.mxu0 %v333_v27  ;;  %353 = vmatprep.subr.bf16.mxu1 %v333_v27 }
  0x3b   :  { %336 = vmatpush1.bf16.msra.mxu0 %v335_v32  ;;  %361 = vmatpush1.bf16.msra.mxu1 %v335_v32 }
  0x3c   :  { %338 = vmatprep.subr.bf16.mxu0 %v337_v33  ;;  %354 = vmatprep.subr.bf16.mxu1 %v337_v33 }
  0x3f   :  { %340 = vmatpush1.bf16.msra.mxu0 %v339_v38  ;;  %362 = vmatpush1.bf16.msra.mxu1 %v339_v38 }
  0x40   :  { %342 = vmatprep.subr.bf16.mxu0 %v341_v39  ;;  %355 = vmatprep.subr.bf16.mxu1 %v341_v39 }
  0x43   :  { %344 = vmatpush1.bf16.msra.mxu0 %v343_v44  ;;  %363 = vmatpush1.bf16.msra.mxu1 %v343_v44 }
  0x44   :  { %346 = vmatprep.subr.bf16.mxu0 %v345_v45  ;;  %356 = vmatprep.subr.bf16.mxu1 %v345_v45 }
  0x47   :  { %348 = vmatpush1.bf16.msra.mxu0 %v347_v48  ;;  %364 = vmatpush1.bf16.msra.mxu1 %v347_v48 }
  0x4a   :  { %156 = vmatmul.mubr.f32.vlgmr.msra.gmra.mrb[0].mxu0 %v53_v49  ;;  %174 = vmatmul.mubr.f32.vlgmr.msra.gmra.mrb[0].mxu1 %v56_v50 }
  0x4b   :  { %161 = vmatprep.mubr.f32.mxu0 %v475_v0  ;;  %179 = vmatprep.mubr.f32.mxu1 %v475_v0 }
  0x4e   :  { %162 = vmatmul.mubr.f32.gmra.mrb[2].mxu0 %v54_v51  ;;  %180 = vmatmul.mubr.f32.gmra.mrb[2].mxu1 %v57_v52 }
  0x4f   :  { %167 = vmatprep.mubr.f32.mxu0 %v475_v0  ;;  %185 = vmatprep.mubr.f32.mxu1 %v475_v0 }
  0x52   :  { %168 = vmatmul.mubr.f32.gmra.mrb[4].mxu0 %v55_v53  ;;  %186 = vmatmul.mubr.f32.gmra.mrb[4].mxu1 %v58_v54 }
 0x11d   :  { %v157_v55 = vpop.f32.mrb[0].mxu0  ;;  %v175_v56 = vpop.f32.mrb[0].mxu1 }
 0x11e   :  { %v192_v57 = vmul.f32 %v157_v55, %v157_v55  ;;  %v195_v58 = vmul.f32 %v175_v56, %v175_v56  ;;  %v159_v59 = vpop.f32.mrb[1].mxu0  ;;  %v177_v60 = vpop.f32.mrb[1].mxu1 }
 0x11f   :  { %v198_v61 = vmul.f32 %v159_v59, %v159_v59  ;;  %v201_v62 = vmul.f32 %v177_v60, %v177_v60 }
 0x121   :  { %v204_v63 = vadd.f32 %v198_v61, %v192_v57  ;;  %v207_v1 = vadd.f32 %v201_v62, %v195_v58  ;;  %v163_v2 = vpop.f32.mrb[2].mxu0  ;;  %v181_v3 = vpop.f32.mrb[2].mxu1 }
 0x122   :  { %v193_v4 = vmul.f32 %v163_v2, %v163_v2  ;;  %v196_v5 = vmul.f32 %v181_v3, %v181_v3  ;;  %v165_v6 = vpop.f32.mrb[3].mxu0  ;;  %v183_v0 = vpop.f32.mrb[3].mxu1 }
 0x123   :  { %v210_v7 = vmax.f32 %v204_v63, 1e-08  ;;  %v213_v8 = vmax.f32 %v207_v1, 1e-08  ;;  %v199_v9 = vmul.f32 %v165_v6, %v165_v6  ;;  %v202_v10 = vmul.f32 %v183_v0, %v183_v0 }
 0x125   :  { %373 = vrsqrt.f32 %v210_v7  ;;  %v205_v11 = vadd.f32 %v199_v9, %v193_v4  ;;  %v208_v12 = vadd.f32 %v202_v10, %v196_v5  ;;  %v169_v13 = vpop.f32.mrb[4].mxu0  ;;  %v187_v14 = vpop.f32.mrb[4].mxu1  ;;  %vm236_vm0 = vcmp.eq.f32.partialorder %v210_v7, inf }
 0x126   :  { %375 = vrcp.f32 %v213_v8  ;;  %v194_v15 = vmul.f32 %v169_v13, %v169_v13  ;;  %v197_v16 = vmul.f32 %v187_v14, %v187_v14  ;;  %v171_v17 = vpop.f32.mrb[5].mxu0  ;;  %v189_v18 = vpop.f32.mrb[5].mxu1  ;;  %v239_v34 = vand.u32 2147483648, %v210_v7 }
 0x127   :  { %377 = vrsqrt.f32 %v213_v8  ;;  %v211_v19 = vmax.f32 %v205_v11, 1e-08  ;;  %v214_v20 = vmax.f32 %v208_v12, 1e-08  ;;  %v200_v21 = vmul.f32 %v171_v17, %v171_v17 }
 0x128   :  { %v203_v22 = vmul.f32 %v189_v18, %v189_v18  ;;  %vm238_vm1 = vcmp.eq.f32.partialorder %v210_v7, 0.0  ;;  %vm257_vm2 = vcmp.eq.f32.partialorder %v213_v8, inf  ;;  %v260_v39 = vand.u32 2147483648, %v213_v8 }
 0x129   :  { %379 = vrsqrt.f32 %v211_v19  ;;  %v206_v23 = vadd.f32 %v200_v21, %v194_v15  ;;  %v295_v27 = vadd.f32 %v211_v19, %v210_v7  ;;  %vm259_vm3 = vcmp.eq.f32.partialorder %v213_v8, 0.0 }
 0x12a   :  { %381 = vrcp.f32 %v214_v20  ;;  %v209_v24 = vadd.f32 %v203_v22, %v197_v16  ;;  %vm243_vm4 = vcmp.eq.f32.partialorder %v211_v19, inf  ;;  %v246_v45 = vand.u32 2147483648, %v211_v19 }
 0x12b   :  { %383 = vrsqrt.f32 %v214_v20  ;;  %v212_v25 = vmax.f32 %v206_v23, 1e-08  ;;  %vm245_vm5 = vcmp.eq.f32.partialorder %v211_v19, 0.0  ;;  %vm264_vm6 = vcmp.eq.f32.partialorder %v214_v20, inf }
 0x12c   :  { %v525_v26 = vmax.f32 %v209_v24, 1e-08  ;;  %v267_v52 = vand.u32 2147483648, %v214_v20  ;;  %vm266_vm7 = vcmp.eq.f32.partialorder %v214_v20, 0.0 }
 0x12d   :  { %385 = vrsqrt.f32 %v212_v25  ;;  %v296_v29 = vadd.f32 %v295_v27, %v212_v25  ;;  %vm250_vm8 = vcmp.eq.f32.partialorder %v212_v25, inf  ;;  %v253_v58 = vand.u32 2147483648, %v212_v25 }
 0x12e   :  { %387 = vrcp.f32 %v525_v26  ;;  %vm252_vm9 = vcmp.eq.f32.partialorder %v212_v25, 0.0  ;;  %vm271_vm10 = vcmp.eq.f32.partialorder %v525_v26, inf  ;;  %v274_v1 = vand.u32 2147483648, %v525_v26 }
 0x12f   :  { %v374_v28 = vpop.eup %373  ;;  %389 = vrsqrt.f32 %v525_v26  ;;  %298 = vst [vmem:[#allocation7 + $0x10] sm:$0xff] %v296_v29  ;;  %vm273_vm11 = vcmp.eq.f32.partialorder %v525_v26, 0.0 }
 0x130   :  { %v376_v30 = vpop.eup %375  ;;  %v235_v31 = vmul.f32 %v374_v28, %v210_v7 }
 0x131   :  { %v378_v32 = vpop.eup %377  ;;  %v217_v33 = vmul.f32 %v376_v30, %v210_v7 }
 0x132   :  { %v237_v35 = vsel %vm236_vm0, %v210_v7, %v235_v31  ;;  %v256_v36 = vmul.f32 %v378_v32, %v213_v8 }
 0x133   :  { %v380_v37 = vpop.eup %379  ;;  %391 = vlog2.f32 %v217_v33  ;;  %v240_v38 = vsel %vm238_vm1, %v239_v34, %v237_v35 }
 0x134   :  { %v382_v40 = vpop.eup %381  ;;  %v242_v41 = vmul.f32 %v380_v37, %v211_v19  ;;  %v258_v42 = vsel %vm257_vm2, %v213_v8, %v256_v36 }
 0x135   :  { %v384_v43 = vpop.eup %383  ;;  %v219_v44 = vmul.f32 %v382_v40, %v211_v19  ;;  %v261_v46 = vsel %vm259_vm3, %v260_v39, %v258_v42 }
 0x136   :  { %v244_v47 = vsel %vm243_vm4, %v211_v19, %v242_v41  ;;  %v263_v48 = vmul.f32 %v384_v43, %v214_v20  ;;  %v276_v49 = vsub.f32 %v240_v38, %v261_v46 }
 0x137   :  { %v386_v50 = vpop.eup %385  ;;  %393 = vlog2.f32 %v219_v44  ;;  %v247_v51 = vsel %vm245_vm5, %v246_v45, %v244_v47 }
 0x138   :  { %v388_v53 = vpop.eup %387  ;;  %v249_v54 = vmul.f32 %v386_v50, %v212_v25  ;;  %v265_v55 = vsel %vm264_vm6, %v214_v20, %v263_v48  ;;  %v286_v3 = vmul.f32 %v276_v49, %v276_v49 }
 0x139   :  { %v390_v56 = vpop.eup %389  ;;  %v221_v57 = vmul.f32 %v388_v53, %v212_v25  ;;  %v268_v59 = vsel %vm266_vm7, %v267_v52, %v265_v55 }
 0x13a   :  { %v251_v60 = vsel %vm250_vm8, %v212_v25, %v249_v54  ;;  %v270_v61 = vmul.f32 %v390_v56, %v525_v26  ;;  %v277_v62 = vsub.f32 %v247_v51, %v268_v59 }
 0x13b   :  { %395 = vlog2.f32 %v221_v57  ;;  %v254_v63 = vsel %vm252_vm9, %v253_v58, %v251_v60 }
 0x13c   :  { %v272_v2 = vsel %vm271_vm10, %v525_v26, %v270_v61  ;;  %v287_v4 = vmul.f32 %v277_v62, %v277_v62 }
 0x13d   :  { %v392_v5 = vpop.eup %391  ;;  %v275_v6 = vsel %vm273_vm11, %v274_v1, %v272_v2 }
 0x13e   :  { %v223_v0 = vmul.f32 0.6931472, %v392_v5  ;;  %v278_v7 = vsub.f32 %v254_v63, %v275_v6  ;;  %v289_v8 = vadd.f32 %v287_v4, %v286_v3 }
 0x140   :  { %v288_v9 = vmul.f32 %v278_v7, %v278_v7  ;;  %v228_v12 = vand.u32 2147483647, %v223_v0 }
 0x141   :  { %v394_v10 = vpop.eup %393 }
 0x142   :  { %v225_v11 = vmul.f32 0.6931472, %v394_v10  ;;  %v290_v13 = vadd.f32 %v289_v8, %v288_v9  ;;  %v231_v17 = vmul.f32 0.5, %v228_v12 }
 0x144   :  { %v229_v14 = vand.u32 2147483647, %v225_v11  ;;  %292 = vst [vmem:[#allocation7 + $0x8] sm:$0xff] %v290_v13 }
 0x145   :  { %v396_v15 = vpop.eup %395 }
 0x146   :  { %v227_v16 = vmul.f32 0.6931472, %v396_v15  ;;  %v232_v18 = vmul.f32 0.5, %v229_v14 }
 0x148   :  { %v230_v19 = vand.u32 2147483647, %v227_v16  ;;  %v280_v20 = vadd.f32 %v232_v18, %v231_v17 }
 0x14a   :  { %v233_v21 = vmul.f32 0.5, %v230_v19 }
 0x14c   :  { %v281_v22 = vadd.f32 %v280_v20, %v233_v21 }
 0x14e   :  { %283 = vst [vmem:[#allocation7] sm:$0xff] %v281_v22 }
 0x14f   :  { %452 = shalt.err (!%p449_p6)
}
 0x150   :  { %s453_s12 = scalar_lea.hbm %s551_s2, 384 }
 0x151   :  { %p454_p7 = scmp.ne.s32.totalorder %s551_s2, %s453_s12  ;;  %p457_p8 = scmp.lt.u32.totalorder %s453_s12, %s551_s2 }
 0x153   :  { %p459_p9 = pnand %p457_p8, %p454_p7 }
 0x155   :  { %462 = shalt.err (!%p459_p9)
}
 0x156   :  { %310 = dma.vmem_to_hbm [thread:$0]  %s305_s8, 384, %s551_s2, [#allocation4], %s470_s19, %s470_s19, %s471_s20  }
 0x157   :  { %467 = dma.done.wait [#allocation4], 384  }
 0x158   :  { %468 = vsyncadd [#allocation4], 4294966912 }
 0x159   :  { %314 = vsyncpa [#allocation3], 1 }
 0x15a   :  { %315 = vsyncpa [#allocation6], 1 }
 0x15b   :  { %316 = vsyncpa [#allocation4], 1 }

</bundles_post_ra>
